<compile_context>
chip_gen: v5e
topology: v5e:2x2
jax: 0.10.0
libtpu: 0.0.40
codegen_flags: <defaults>
</compile_context>

<pallas_src>
import functools

import jax
import jax.numpy as jnp
from jax.experimental import pallas as pl
from jax.experimental.pallas import tpu as pltpu


def _round_up(n, m):
    return ((n + m - 1) // m) * m


# --------------------------------------------------------------------------- kernel
def _residual_fcnet_kernel(x_ref, w_in_ref, b_in_ref,
                           w1_ref, b1_ref, w2_ref, b2_ref,
                           out_ref, *, depth, num_inputs, n_chunks):
    tb = x_ref.shape[0]
    cm = tb // n_chunks          # rows per independent chunk (multiple of 8)

    w_in = w_in_ref[...]         # (num_inputs, F) f32
    b_in = b_in_ref[...]         # (1, F) f32

    # ---- Input projection + ReLU, per chunk --------------------------------
    # K is tiny (e.g. 2-4 lon/lat features): an MXU pass would be almost all
    # padding, so do it as VPU broadcast-FMAs in f32 and keep it off the MXU.
    hs = []
    for c in range(n_chunks):
        x = x_ref[c * cm:(c + 1) * cm, :]                 # (cm, num_inputs) f32
        if num_inputs <= 8:
            h = x[:, 0:1] * w_in[0:1, :]
            for k in range(1, num_inputs):
                h = h + x[:, k:k + 1] * w_in[k:k + 1, :]
            h = h + b_in
        else:
            h = jnp.dot(x, w_in, preferred_element_type=jnp.float32) + b_in
        hs.append(jnp.maximum(h, 0.0))

    # ---- depth residual blocks (static Python unroll) ----------------------
    # bf16 operands on the MXU, f32 accumulation; bias adds, ReLUs and the
    # residual path stay in f32.  The n_chunks matmuls per layer are mutually
    # independent -> the scheduler can co-issue them across MXUs.
    for d in range(depth):
        w1d = w1_ref[d]          # (F, F) bf16
        w2d = w2_ref[d]
        b1d = b1_ref[d]          # (1, F) f32
        b2d = b2_ref[d]
        ys = [jnp.maximum(
                  jnp.dot(hs[c].astype(jnp.bfloat16), w1d,
                          preferred_element_type=jnp.float32) + b1d, 0.0)
              for c in range(n_chunks)]
        # nn.Dropout() in eval mode is the identity (inference forward).
        ys = [jnp.maximum(
                  jnp.dot(ys[c].astype(jnp.bfloat16), w2d,
                          preferred_element_type=jnp.float32) + b2d, 0.0)
              for c in range(n_chunks)]
        hs = [hs[c] + ys[c] for c in range(n_chunks)]

    for c in range(n_chunks):
        out_ref[c * cm:(c + 1) * cm, :] = hs[c].astype(out_ref.dtype)


# --------------------------------------------------------------------------- wrapper
def prepare_params(params):
    """One-time parameter prep (call at load time, NOT per forward):
    residual-block weights -> bf16 (native MXU operand dtype, halves weight
    VMEM/DMA); input projection and all biases stay f32."""
    w_in, b_in, w1, b1, w2, b2 = params
    # TODO(synk): optional fp8 weight quantization for the v7x MXU (keep f32
    # accumulation / residual path), gated on an accuracy check vs the f32 ref.
    return (w_in.astype(jnp.float32), b_in.astype(jnp.float32),
            w1.astype(jnp.bfloat16), b1.astype(jnp.float32),
            w2.astype(jnp.bfloat16), b2.astype(jnp.float32))


def _pick_tile(B, num_inputs, F, depth, block_b, vmem_budget_bytes):
    """Pick the batch tile: as large as the VMEM budget allows, multiple of 8."""
    # Resident parameters (constant index_map; x2 for default double-buffering).
    param_bytes = 2 * ((num_inputs * F + F) * 4 + 2 * depth * (F * F * 2 + F * 4))
    # Per-row pipelined bytes: double-buffered x + out tiles, plus ~3 live f32
    # activation rows inside the kernel body.
    per_row = 2 * num_inputs * 4 + 2 * F * 4 + 3 * F * 4
    avail = max(vmem_budget_bytes - param_bytes, 8 * per_row)
    tb_cap = max(8, (avail // per_row) // 8 * 8)
    block_b = max(8, (block_b // 8) * 8)          # enforce tb % 8 == 0
    return min(block_b, tb_cap, _round_up(B, 8))


def _forward_impl(x, params, *, depth, block_b=1024, n_chunks=4,
                  out_dtype=jnp.float32):
    """x: (B, num_inputs) float32. Returns loc_emb: (B, num_filts) out_dtype."""
    w_in, b_in, w1, b1, w2, b2 = params
    B, num_inputs = x.shape
    F = w_in.shape[1]

    # No-ops if prepare_params() was used; inside jit they fold away otherwise.
    w1 = w1.astype(jnp.bfloat16)
    w2 = w2.astype(jnp.bfloat16)

    # Batch tile: big (amortize the ~0.35 us/step pipeline overhead) but within
    # a VMEM budget that is safe even for v7x's 32 MiB scoped default.
    tb = _pick_tile(B, num_inputs, F, depth, block_b,
                    vmem_budget_bytes=24 << 20)
    b_pad = _round_up(B, tb)
    if b_pad != B:
        x = jnp.pad(x, ((0, b_pad - B), (0, 0)))
    grid = (b_pad // tb,)

    # Independent row chunks per tile (chunk rows must stay a multiple of 8).
    nc = max(1, min(n_chunks, tb // 8))
    while tb % (nc * 8) != 0:
        nc -= 1

    kernel = functools.partial(_residual_fcnet_kernel, depth=depth,
                               num_inputs=num_inputs, n_chunks=nc)

    flops = 2 * b_pad * num_inputs * F + 4 * depth * b_pad * F * F
    bytes_accessed = (b_pad * num_inputs * 4
                      + b_pad * F * jnp.dtype(out_dtype).itemsize
                      + (num_inputs * F + F) * 4
                      + 2 * depth * (F * F * 2 + F * 4))

    out = pl.pallas_call(
        kernel,
        out_shape=jax.ShapeDtypeStruct((b_pad, F), out_dtype),
        grid_spec=pltpu.PrefetchScalarGridSpec(
            num_scalar_prefetch=0,
            grid=grid,
            in_specs=[
                # Batch-tiled input (pipelined / double-buffered by Pallas).
                pl.BlockSpec((tb, num_inputs), lambda i: (i, 0)),
                # Parameters: constant index_map -> fetched once, VMEM-resident.
                pl.BlockSpec((num_inputs, F), lambda i: (0, 0)),
                pl.BlockSpec((1, F), lambda i: (0, 0)),
                pl.BlockSpec((depth, F, F), lambda i: (0, 0, 0)),
                pl.BlockSpec((depth, 1, F), lambda i: (0, 0, 0)),
                pl.BlockSpec((depth, F, F), lambda i: (0, 0, 0)),
                pl.BlockSpec((depth, 1, F), lambda i: (0, 0, 0)),
            ],
            out_specs=pl.BlockSpec((tb, F), lambda i: (i, 0)),
        ),
        compiler_params=pltpu.CompilerParams(
            dimension_semantics=("parallel",)),
        cost_estimate=pl.CostEstimate(flops=flops, transcendentals=0,
                                      bytes_accessed=bytes_accessed),
    )(x, w_in, b_in, w1, b1, w2, b2)

    return out[:B]


# Jitted entry point: pad + kernel + slice fuse into one dispatch; depth/tiling
# are static so there is no per-call Python/dispatch overhead beyond XLA launch.
residual_fcnet_forward = jax.jit(
    _forward_impl, static_argnames=("depth", "block_b", "n_chunks", "out_dtype"))


# --------------------------------------------------------------------------- init / reference
def init_params(key, num_inputs, num_filts, depth):
    """Deterministic init mirroring PyTorch nn.Linear defaults U(-1/sqrt(fan_in), +)."""
    keys = jax.random.split(key, 6)

    def uniform(k, shape, fan_in):
        bound = 1.0 / jnp.sqrt(float(fan_in))
        return jax.random.uniform(k, shape, jnp.float32, -bound, bound)

    w_in = uniform(keys[0], (num_inputs, num_filts), num_inputs)
    b_in = uniform(keys[1], (1, num_filts), num_inputs)
    w1 = uniform(keys[2], (depth, num_filts, num_filts), num_filts)
    b1 = uniform(keys[3], (depth, 1, num_filts), num_filts)
    w2 = uniform(keys[4], (depth, num_filts, num_filts), num_filts)
    b2 = uniform(keys[5], (depth, 1, num_filts), num_filts)
    return (w_in, b_in, w1, b1, w2, b2)


def reference_forward(x, params, depth):
    """Pure-JAX f32 reference of ResidualFCNet.forward (return_feats=True)."""
    w_in, b_in, w1, b1, w2, b2 = params
    h = jnp.maximum(x @ w_in + b_in, 0.0)
    for d in range(depth):
        y = jnp.maximum(h @ w1[d] + b1[d], 0.0)
        y = jnp.maximum(y @ w2[d] + b2[d], 0.0)
        h = h + y
    return h


# --------------------------------------------------------------------------- main
if __name__ == "__main__":
    # SINRConfig-like small shapes: num_inputs=4, num_filts=128, depth=4, num_classes=0.
    NUM_INPUTS, NUM_FILTS, DEPTH, BATCH = 4, 128, 4, 8

    key = jax.random.PRNGKey(0)
    k_x, k_p, k_big = jax.random.split(key, 3)
    x = jax.random.normal(k_x, (BATCH, NUM_INPUTS), jnp.float32)

    params_f32 = init_params(k_p, NUM_INPUTS, NUM_FILTS, DEPTH)
    params = prepare_params(params_f32)          # one-time bf16 weight prep

    out = jax.block_until_ready(residual_fcnet_forward(x, params, depth=DEPTH))
    ref = reference_forward(x, params_f32, DEPTH)
    assert out.shape == (BATCH, NUM_FILTS)
    # bf16 matmul operands with f32 accumulation -> loose tolerance vs f32 reference.
    assert jnp.allclose(out, ref, atol=5e-2, rtol=5e-2)

    # Ragged batch (B not a multiple of 8) -> exercises the padding path.
    x_odd = x[:5]
    out_odd = jax.block_until_ready(
        residual_fcnet_forward(x_odd, params, depth=DEPTH))
    assert out_odd.shape == (5, NUM_FILTS)
    assert jnp.allclose(out_odd, ref[:5], atol=5e-2, rtol=5e-2)

    # Multi-tile grid + intra-tile M-splitting (4 independent 8-row chunks).
    x_big = jax.random.normal(k_big, (40, NUM_INPUTS), jnp.float32)
    out_big = jax.block_until_ready(
        residual_fcnet_forward(x_big, params, depth=DEPTH, block_b=32, n_chunks=4))
    ref_big = reference_forward(x_big, params_f32, DEPTH)
    assert out_big.shape == (40, NUM_FILTS)
    assert jnp.allclose(out_big, ref_big, atol=5e-2, rtol=5e-2)

    print("KERNEL_OK")
</pallas_src>

<mosaic_0001>
module attributes {stable_mosaic.version = 11 : i64} {
  func.func @_residual_fcnet_kernel(%arg0: i32, %arg1: memref<8x4xf32, #tpu.memory_space<vmem>>, %arg2: memref<4x128xf32, #tpu.memory_space<vmem>>, %arg3: memref<1x128xf32, #tpu.memory_space<vmem>>, %arg4: memref<4x128x128xbf16, #tpu.memory_space<vmem>>, %arg5: memref<4x1x128xf32, #tpu.memory_space<vmem>>, %arg6: memref<4x128x128xbf16, #tpu.memory_space<vmem>>, %arg7: memref<4x1x128xf32, #tpu.memory_space<vmem>>, %arg8: memref<8x128xf32, #tpu.memory_space<vmem>>) attributes {dimension_semantics = [#tpu.dimension_semantics<parallel>], iteration_bounds = array<i64: 1>, scalar_prefetch = 0 : i64, scratch_operands = 0 : i64, tpu.core_type = #tpu.core_type<tc>, window_params = [{transform_indices = @transform_0, window_bounds = array<i64: 8, 4>}, {pipeline_mode = #tpu.pipeline_mode<synchronous>, transform_indices = @transform_1, window_bounds = array<i64: 4, 128>}, {pipeline_mode = #tpu.pipeline_mode<synchronous>, transform_indices = @transform_2, window_bounds = array<i64: 1, 128>}, {pipeline_mode = #tpu.pipeline_mode<synchronous>, transform_indices = @transform_3, window_bounds = array<i64: 4, 128, 128>}, {pipeline_mode = #tpu.pipeline_mode<synchronous>, transform_indices = @transform_4, window_bounds = array<i64: 4, 1, 128>}, {pipeline_mode = #tpu.pipeline_mode<synchronous>, transform_indices = @transform_5, window_bounds = array<i64: 4, 128, 128>}, {pipeline_mode = #tpu.pipeline_mode<synchronous>, transform_indices = @transform_6, window_bounds = array<i64: 4, 1, 128>}, {transform_indices = @transform_7, window_bounds = array<i64: 8, 128>}]} {
    %c0 = arith.constant 0 : index
    %c0_0 = arith.constant 0 : index
    %0 = vector.load %arg2[%c0, %c0_0] : memref<4x128xf32, #tpu.memory_space<vmem>>, vector<4x128xf32>
    %c0_1 = arith.constant 0 : index
    %c0_2 = arith.constant 0 : index
    %1 = vector.load %arg3[%c0_1, %c0_2] : memref<1x128xf32, #tpu.memory_space<vmem>>, vector<1x128xf32>
    %c0_3 = arith.constant 0 : index
    %c0_4 = arith.constant 0 : index
    %2 = vector.load %arg1[%c0_3, %c0_4] : memref<8x4xf32, #tpu.memory_space<vmem>>, vector<8x4xf32>
    %3 = vector.extract_strided_slice %2 {offsets = [0, 0], sizes = [8, 1], strides = [1, 1]} : vector<8x4xf32> to vector<8x1xf32>
    %4 = vector.extract_strided_slice %0 {offsets = [0, 0], sizes = [1, 128], strides = [1, 1]} : vector<4x128xf32> to vector<1x128xf32>
    %5 = vector.broadcast %3 : vector<8x1xf32> to vector<8x128xf32>
    %6 = vector.broadcast %4 : vector<1x128xf32> to vector<8x128xf32>
    %7 = arith.mulf %5, %6 : vector<8x128xf32>
    %8 = vector.extract_strided_slice %2 {offsets = [0, 1], sizes = [8, 1], strides = [1, 1]} : vector<8x4xf32> to vector<8x1xf32>
    %9 = vector.extract_strided_slice %0 {offsets = [1, 0], sizes = [1, 128], strides = [1, 1]} : vector<4x128xf32> to vector<1x128xf32>
    %10 = vector.broadcast %8 : vector<8x1xf32> to vector<8x128xf32>
    %11 = vector.broadcast %9 : vector<1x128xf32> to vector<8x128xf32>
    %12 = arith.mulf %10, %11 : vector<8x128xf32>
    %13 = arith.addf %7, %12 : vector<8x128xf32>
    %14 = vector.extract_strided_slice %2 {offsets = [0, 2], sizes = [8, 1], strides = [1, 1]} : vector<8x4xf32> to vector<8x1xf32>
    %15 = vector.extract_strided_slice %0 {offsets = [2, 0], sizes = [1, 128], strides = [1, 1]} : vector<4x128xf32> to vector<1x128xf32>
    %16 = vector.broadcast %14 : vector<8x1xf32> to vector<8x128xf32>
    %17 = vector.broadcast %15 : vector<1x128xf32> to vector<8x128xf32>
    %18 = arith.mulf %16, %17 : vector<8x128xf32>
    %19 = arith.addf %13, %18 : vector<8x128xf32>
    %20 = vector.extract_strided_slice %2 {offsets = [0, 3], sizes = [8, 1], strides = [1, 1]} : vector<8x4xf32> to vector<8x1xf32>
    %21 = vector.extract_strided_slice %0 {offsets = [3, 0], sizes = [1, 128], strides = [1, 1]} : vector<4x128xf32> to vector<1x128xf32>
    %22 = vector.broadcast %20 : vector<8x1xf32> to vector<8x128xf32>
    %23 = vector.broadcast %21 : vector<1x128xf32> to vector<8x128xf32>
    %24 = arith.mulf %22, %23 : vector<8x128xf32>
    %25 = arith.addf %19, %24 : vector<8x128xf32>
    %26 = vector.broadcast %1 : vector<1x128xf32> to vector<8x128xf32>
    %27 = arith.addf %25, %26 : vector<8x128xf32>
    %cst = arith.constant 0.000000e+00 : f32
    %28 = vector.broadcast %cst : f32 to vector<8x128xf32>
    %29 = arith.maximumf %27, %28 : vector<8x128xf32>
    %c0_5 = arith.constant 0 : index
    %c0_6 = arith.constant 0 : index
    %c0_7 = arith.constant 0 : index
    %30 = vector.load %arg4[%c0_5, %c0_6, %c0_7] : memref<4x128x128xbf16, #tpu.memory_space<vmem>>, vector<1x128x128xbf16>
    %31 = vector.shape_cast %30 : vector<1x128x128xbf16> to vector<128x128xbf16>
    %c0_8 = arith.constant 0 : index
    %c0_9 = arith.constant 0 : index
    %c0_10 = arith.constant 0 : index
    %32 = vector.load %arg6[%c0_8, %c0_9, %c0_10] : memref<4x128x128xbf16, #tpu.memory_space<vmem>>, vector<1x128x128xbf16>
    %33 = vector.shape_cast %32 : vector<1x128x128xbf16> to vector<128x128xbf16>
    %c0_11 = arith.constant 0 : index
    %c0_12 = arith.constant 0 : index
    %c0_13 = arith.constant 0 : index
    %34 = vector.load %arg5[%c0_11, %c0_12, %c0_13] : memref<4x1x128xf32, #tpu.memory_space<vmem>>, vector<1x1x128xf32>
    %35 = vector.shape_cast %34 : vector<1x1x128xf32> to vector<1x128xf32>
    %c0_14 = arith.constant 0 : index
    %c0_15 = arith.constant 0 : index
    %c0_16 = arith.constant 0 : index
    %36 = vector.load %arg7[%c0_14, %c0_15, %c0_16] : memref<4x1x128xf32, #tpu.memory_space<vmem>>, vector<1x1x128xf32>
    %37 = vector.shape_cast %36 : vector<1x1x128xf32> to vector<1x128xf32>
    %38 = arith.truncf %29 : vector<8x128xf32> to vector<8x128xbf16>
    %cst_17 = arith.constant dense<0.000000e+00> : vector<8x128xf32>
    %39 = tpu.matmul %38, %31, %cst_17 {dimension_numbers = #tpu.dot_dimension_numbers<[1], [0], [0], [1], [0, 0, 1, 1], [], []>} : vector<8x128xbf16>, vector<128x128xbf16>, vector<8x128xf32> -> vector<8x128xf32>
    %40 = vector.broadcast %35 : vector<1x128xf32> to vector<8x128xf32>
    %41 = arith.addf %39, %40 : vector<8x128xf32>
    %cst_18 = arith.constant 0.000000e+00 : f32
    %42 = vector.broadcast %cst_18 : f32 to vector<8x128xf32>
    %43 = arith.maximumf %41, %42 : vector<8x128xf32>
    %44 = arith.truncf %43 : vector<8x128xf32> to vector<8x128xbf16>
    %cst_19 = arith.constant dense<0.000000e+00> : vector<8x128xf32>
    %45 = tpu.matmul %44, %33, %cst_19 {dimension_numbers = #tpu.dot_dimension_numbers<[1], [0], [0], [1], [0, 0, 1, 1], [], []>} : vector<8x128xbf16>, vector<128x128xbf16>, vector<8x128xf32> -> vector<8x128xf32>
    %46 = vector.broadcast %37 : vector<1x128xf32> to vector<8x128xf32>
    %47 = arith.addf %45, %46 : vector<8x128xf32>
    %cst_20 = arith.constant 0.000000e+00 : f32
    %48 = vector.broadcast %cst_20 : f32 to vector<8x128xf32>
    %49 = arith.maximumf %47, %48 : vector<8x128xf32>
    %50 = arith.addf %29, %49 : vector<8x128xf32>
    %c1 = arith.constant 1 : index
    %c0_21 = arith.constant 0 : index
    %c0_22 = arith.constant 0 : index
    %51 = vector.load %arg4[%c1, %c0_21, %c0_22] : memref<4x128x128xbf16, #tpu.memory_space<vmem>>, vector<1x128x128xbf16>
    %52 = vector.shape_cast %51 : vector<1x128x128xbf16> to vector<128x128xbf16>
    %c1_23 = arith.constant 1 : index
    %c0_24 = arith.constant 0 : index
    %c0_25 = arith.constant 0 : index
    %53 = vector.load %arg6[%c1_23, %c0_24, %c0_25] : memref<4x128x128xbf16, #tpu.memory_space<vmem>>, vector<1x128x128xbf16>
    %54 = vector.shape_cast %53 : vector<1x128x128xbf16> to vector<128x128xbf16>
    %c1_26 = arith.constant 1 : index
    %c0_27 = arith.constant 0 : index
    %c0_28 = arith.constant 0 : index
    %55 = vector.load %arg5[%c1_26, %c0_27, %c0_28] : memref<4x1x128xf32, #tpu.memory_space<vmem>>, vector<1x1x128xf32>
    %56 = vector.shape_cast %55 : vector<1x1x128xf32> to vector<1x128xf32>
    %c1_29 = arith.constant 1 : index
    %c0_30 = arith.constant 0 : index
    %c0_31 = arith.constant 0 : index
    %57 = vector.load %arg7[%c1_29, %c0_30, %c0_31] : memref<4x1x128xf32, #tpu.memory_space<vmem>>, vector<1x1x128xf32>
    %58 = vector.shape_cast %57 : vector<1x1x128xf32> to vector<1x128xf32>
    %59 = arith.truncf %50 : vector<8x128xf32> to vector<8x128xbf16>
    %cst_32 = arith.constant dense<0.000000e+00> : vector<8x128xf32>
    %60 = tpu.matmul %59, %52, %cst_32 {dimension_numbers = #tpu.dot_dimension_numbers<[1], [0], [0], [1], [0, 0, 1, 1], [], []>} : vector<8x128xbf16>, vector<128x128xbf16>, vector<8x128xf32> -> vector<8x128xf32>
    %61 = vector.broadcast %56 : vector<1x128xf32> to vector<8x128xf32>
    %62 = arith.addf %60, %61 : vector<8x128xf32>
    %cst_33 = arith.constant 0.000000e+00 : f32
    %63 = vector.broadcast %cst_33 : f32 to vector<8x128xf32>
    %64 = arith.maximumf %62, %63 : vector<8x128xf32>
    %65 = arith.truncf %64 : vector<8x128xf32> to vector<8x128xbf16>
    %cst_34 = arith.constant dense<0.000000e+00> : vector<8x128xf32>
    %66 = tpu.matmul %65, %54, %cst_34 {dimension_numbers = #tpu.dot_dimension_numbers<[1], [0], [0], [1], [0, 0, 1, 1], [], []>} : vector<8x128xbf16>, vector<128x128xbf16>, vector<8x128xf32> -> vector<8x128xf32>
    %67 = vector.broadcast %58 : vector<1x128xf32> to vector<8x128xf32>
    %68 = arith.addf %66, %67 : vector<8x128xf32>
    %cst_35 = arith.constant 0.000000e+00 : f32
    %69 = vector.broadcast %cst_35 : f32 to vector<8x128xf32>
    %70 = arith.maximumf %68, %69 : vector<8x128xf32>
    %71 = arith.addf %50, %70 : vector<8x128xf32>
    %c2 = arith.constant 2 : index
    %c0_36 = arith.constant 0 : index
    %c0_37 = arith.constant 0 : index
    %72 = vector.load %arg4[%c2, %c0_36, %c0_37] : memref<4x128x128xbf16, #tpu.memory_space<vmem>>, vector<1x128x128xbf16>
    %73 = vector.shape_cast %72 : vector<1x128x128xbf16> to vector<128x128xbf16>
    %c2_38 = arith.constant 2 : index
    %c0_39 = arith.constant 0 : index
    %c0_40 = arith.constant 0 : index
    %74 = vector.load %arg6[%c2_38, %c0_39, %c0_40] : memref<4x128x128xbf16, #tpu.memory_space<vmem>>, vector<1x128x128xbf16>
    %75 = vector.shape_cast %74 : vector<1x128x128xbf16> to vector<128x128xbf16>
    %c2_41 = arith.constant 2 : index
    %c0_42 = arith.constant 0 : index
    %c0_43 = arith.constant 0 : index
    %76 = vector.load %arg5[%c2_41, %c0_42, %c0_43] : memref<4x1x128xf32, #tpu.memory_space<vmem>>, vector<1x1x128xf32>
    %77 = vector.shape_cast %76 : vector<1x1x128xf32> to vector<1x128xf32>
    %c2_44 = arith.constant 2 : index
    %c0_45 = arith.constant 0 : index
    %c0_46 = arith.constant 0 : index
    %78 = vector.load %arg7[%c2_44, %c0_45, %c0_46] : memref<4x1x128xf32, #tpu.memory_space<vmem>>, vector<1x1x128xf32>
    %79 = vector.shape_cast %78 : vector<1x1x128xf32> to vector<1x128xf32>
    %80 = arith.truncf %71 : vector<8x128xf32> to vector<8x128xbf16>
    %cst_47 = arith.constant dense<0.000000e+00> : vector<8x128xf32>
    %81 = tpu.matmul %80, %73, %cst_47 {dimension_numbers = #tpu.dot_dimension_numbers<[1], [0], [0], [1], [0, 0, 1, 1], [], []>} : vector<8x128xbf16>, vector<128x128xbf16>, vector<8x128xf32> -> vector<8x128xf32>
    %82 = vector.broadcast %77 : vector<1x128xf32> to vector<8x128xf32>
    %83 = arith.addf %81, %82 : vector<8x128xf32>
    %cst_48 = arith.constant 0.000000e+00 : f32
    %84 = vector.broadcast %cst_48 : f32 to vector<8x128xf32>
    %85 = arith.maximumf %83, %84 : vector<8x128xf32>
    %86 = arith.truncf %85 : vector<8x128xf32> to vector<8x128xbf16>
    %cst_49 = arith.constant dense<0.000000e+00> : vector<8x128xf32>
    %87 = tpu.matmul %86, %75, %cst_49 {dimension_numbers = #tpu.dot_dimension_numbers<[1], [0], [0], [1], [0, 0, 1, 1], [], []>} : vector<8x128xbf16>, vector<128x128xbf16>, vector<8x128xf32> -> vector<8x128xf32>
    %88 = vector.broadcast %79 : vector<1x128xf32> to vector<8x128xf32>
    %89 = arith.addf %87, %88 : vector<8x128xf32>
    %cst_50 = arith.constant 0.000000e+00 : f32
    %90 = vector.broadcast %cst_50 : f32 to vector<8x128xf32>
    %91 = arith.maximumf %89, %90 : vector<8x128xf32>
    %92 = arith.addf %71, %91 : vector<8x128xf32>
    %c3 = arith.constant 3 : index
    %c0_51 = arith.constant 0 : index
    %c0_52 = arith.constant 0 : index
    %93 = vector.load %arg4[%c3, %c0_51, %c0_52] : memref<4x128x128xbf16, #tpu.memory_space<vmem>>, vector<1x128x128xbf16>
    %94 = vector.shape_cast %93 : vector<1x128x128xbf16> to vector<128x128xbf16>
    %c3_53 = arith.constant 3 : index
    %c0_54 = arith.constant 0 : index
    %c0_55 = arith.constant 0 : index
    %95 = vector.load %arg6[%c3_53, %c0_54, %c0_55] : memref<4x128x128xbf16, #tpu.memory_space<vmem>>, vector<1x128x128xbf16>
    %96 = vector.shape_cast %95 : vector<1x128x128xbf16> to vector<128x128xbf16>
    %c3_56 = arith.constant 3 : index
    %c0_57 = arith.constant 0 : index
    %c0_58 = arith.constant 0 : index
    %97 = vector.load %arg5[%c3_56, %c0_57, %c0_58] : memref<4x1x128xf32, #tpu.memory_space<vmem>>, vector<1x1x128xf32>
    %98 = vector.shape_cast %97 : vector<1x1x128xf32> to vector<1x128xf32>
    %c3_59 = arith.constant 3 : index
    %c0_60 = arith.constant 0 : index
    %c0_61 = arith.constant 0 : index
    %99 = vector.load %arg7[%c3_59, %c0_60, %c0_61] : memref<4x1x128xf32, #tpu.memory_space<vmem>>, vector<1x1x128xf32>
    %100 = vector.shape_cast %99 : vector<1x1x128xf32> to vector<1x128xf32>
    %101 = arith.truncf %92 : vector<8x128xf32> to vector<8x128xbf16>
    %cst_62 = arith.constant dense<0.000000e+00> : vector<8x128xf32>
    %102 = tpu.matmul %101, %94, %cst_62 {dimension_numbers = #tpu.dot_dimension_numbers<[1], [0], [0], [1], [0, 0, 1, 1], [], []>} : vector<8x128xbf16>, vector<128x128xbf16>, vector<8x128xf32> -> vector<8x128xf32>
    %103 = vector.broadcast %98 : vector<1x128xf32> to vector<8x128xf32>
    %104 = arith.addf %102, %103 : vector<8x128xf32>
    %cst_63 = arith.constant 0.000000e+00 : f32
    %105 = vector.broadcast %cst_63 : f32 to vector<8x128xf32>
    %106 = arith.maximumf %104, %105 : vector<8x128xf32>
    %107 = arith.truncf %106 : vector<8x128xf32> to vector<8x128xbf16>
    %cst_64 = arith.constant dense<0.000000e+00> : vector<8x128xf32>
    %108 = tpu.matmul %107, %96, %cst_64 {dimension_numbers = #tpu.dot_dimension_numbers<[1], [0], [0], [1], [0, 0, 1, 1], [], []>} : vector<8x128xbf16>, vector<128x128xbf16>, vector<8x128xf32> -> vector<8x128xf32>
    %109 = vector.broadcast %100 : vector<1x128xf32> to vector<8x128xf32>
    %110 = arith.addf %108, %109 : vector<8x128xf32>
    %cst_65 = arith.constant 0.000000e+00 : f32
    %111 = vector.broadcast %cst_65 : f32 to vector<8x128xf32>
    %112 = arith.maximumf %110, %111 : vector<8x128xf32>
    %113 = arith.addf %92, %112 : vector<8x128xf32>
    %c0_66 = arith.constant 0 : index
    %c0_67 = arith.constant 0 : index
    %114 = vector.load %arg8[%c0_66, %c0_67] : memref<8x128xf32, #tpu.memory_space<vmem>>, vector<8x128xf32>
    tpu.vector_store %arg8[%c0_66, %c0_67], %113 {strides = array<i32>} : memref<8x128xf32, #tpu.memory_space<vmem>>, vector<8x128xf32>,
    return
  }
  func.func @transform_0(%arg0: i32) -> (i32, i32) {
    %c0_i32 = arith.constant 0 : i32
    %c0_i32_0 = arith.constant 0 : i32
    return %arg0, %c0_i32 : i32, i32
  }
  func.func @transform_1(%arg0: i32) -> (i32, i32) {
    %c0_i32 = arith.constant 0 : i32
    %c0_i32_0 = arith.constant 0 : i32
    %c0_i32_1 = arith.constant 0 : i32
    return %c0_i32, %c0_i32_0 : i32, i32
  }
  func.func @transform_2(%arg0: i32) -> (i32, i32) {
    %c0_i32 = arith.constant 0 : i32
    %c0_i32_0 = arith.constant 0 : i32
    %c0_i32_1 = arith.constant 0 : i32
    return %c0_i32, %c0_i32_0 : i32, i32
  }
  func.func @transform_3(%arg0: i32) -> (i32, i32, i32) {
    %c0_i32 = arith.constant 0 : i32
    %c0_i32_0 = arith.constant 0 : i32
    %c0_i32_1 = arith.constant 0 : i32
    %c0_i32_2 = arith.constant 0 : i32
    return %c0_i32, %c0_i32_0, %c0_i32_1 : i32, i32, i32
  }
  func.func @transform_4(%arg0: i32) -> (i32, i32, i32) {
    %c0_i32 = arith.constant 0 : i32
    %c0_i32_0 = arith.constant 0 : i32
    %c0_i32_1 = arith.constant 0 : i32
    %c0_i32_2 = arith.constant 0 : i32
    return %c0_i32, %c0_i32_0, %c0_i32_1 : i32, i32, i32
  }
  func.func @transform_5(%arg0: i32) -> (i32, i32, i32) {
    %c0_i32 = arith.constant 0 : i32
    %c0_i32_0 = arith.constant 0 : i32
    %c0_i32_1 = arith.constant 0 : i32
    %c0_i32_2 = arith.constant 0 : i32
    return %c0_i32, %c0_i32_0, %c0_i32_1 : i32, i32, i32
  }
  func.func @transform_6(%arg0: i32) -> (i32, i32, i32) {
    %c0_i32 = arith.constant 0 : i32
    %c0_i32_0 = arith.constant 0 : i32
    %c0_i32_1 = arith.constant 0 : i32
    %c0_i32_2 = arith.constant 0 : i32
    return %c0_i32, %c0_i32_0, %c0_i32_1 : i32, i32, i32
  }
  func.func @transform_7(%arg0: i32) -> (i32, i32) {
    %c0_i32 = arith.constant 0 : i32
    %c0_i32_0 = arith.constant 0 : i32
    return %arg0, %c0_i32 : i32, i32
  }
}

</mosaic_0001>

<bundles_post_ra>
// kernel: _forward_impl.1
= control target key start
LH: loop header
LB: loop body
LE: loop exit
PB: predicated region body
PF: predicated region fallthrough
CT: control target
= control target key end

     0   :  { %12 = vsyncpa [#allocation3], 0  ;;  %s1312_s0 = inlined_call_operand.vmem [shape: f32[8,4], index: 0, kind: input, shape index: {}]   ;;  %s1313_s1 = inlined_call_operand.vmem [shape: f32[4,128], index: 1, kind: input, shape index: {}]   ;;  %s1314_s2 = inlined_call_operand.vmem [shape: f32[1,128], index: 2, kind: input, shape index: {}]   ;;  %s1315_s3 = inlined_call_operand.hbm [shape: bf16[4,128,128], index: 3, kind: input, shape index: {}]   ;;  %s1316_s4 = inlined_call_operand.vmem [shape: f32[4,1,128], index: 4, kind: input, shape index: {}]   ;;  %s1317_s5 = inlined_call_operand.hbm [shape: bf16[4,128,128], index: 5, kind: input, shape index: {}]   ;;  %s1318_s6 = inlined_call_operand.vmem [shape: f32[4,1,128], index: 6, kind: input, shape index: {}]   ;;  %s1319_s7 = inlined_call_operand.hbm [shape: f32[8,128], index: 7, kind: output, shape index: {}]  }
   0x1   :  { %13 = vsyncpa [#allocation6], 0 }
   0x2   :  { %14 = vsyncpa [#allocation4], 0  ;;  %s25_s26 = sshll.u32 %s1315_s3, 4  ;;  %s1221_s27 = smov [#allocation2]   ;;  %s26_s26 = int_to_ptr.hbm [resolvable:$true] %s25_s26 }
   0x3   :  { %s27_s28 = sshll.u32 %s1221_s27, 4  ;;  %s40_s8 = sshll.u32 %s1317_s5, 4  ;;  %s28_s28 = int_to_ptr.vmem [resolvable:$true] %s27_s28  ;;  %s41_s8 = int_to_ptr.hbm [resolvable:$true] %s40_s8 }
   0x4   :  { %s1222_s9 = smov 64   ;;  %s1223_s10 = smov 4  }
   0x5   :  { %33 = dma.hbm_to_vmem [thread:$0]  %s26_s26, 4096, %s28_s28, [#allocation3], %s1222_s9, %s1222_s9, %s1223_s10  }
   0x6   :  { %s1224_s11 = smov [#allocation5]  }
   0x7   :  { %s42_s12 = sshll.u32 %s1224_s11, 4  ;;  %s43_s12 = int_to_ptr.vmem [resolvable:$true] %s42_s12 }
   0x8   :  { %48 = dma.hbm_to_vmem [thread:$0]  %s41_s8, 4096, %s43_s12, [#allocation6], %s1222_s9, %s1222_s9, %s1223_s10  }
   0x9   :  { %1215 = dma.done.wait [#allocation3], 4096  }
   0xa   :  { %1216 = vsyncadd [#allocation3], 4294963200 }
   0xb   :  { %1217 = dma.done.wait [#allocation6], 4096  }
   0xc   :  { %1218 = vsyncadd [#allocation6], 4294963200  ;;  %v1225_v0 = vmov 0   ;;  %v1226_v1 = vmov 2   ;;  %v61_v2 = vld [vmem:[%s1312_s0] sm:$0xff]  ;;  %v1063_v3 = vld [vmem:[#allocation2 + $0x38] sm:$0xff] }
   0xd   :  { %1129 = vset.pattern.permute.xlu0 %v1225_v0  ;;  %1131 = vset.pattern.permute.xlu1 %v1226_v1  ;;  %v1062_v4 = vld [vmem:[#allocation2 + $0x30] sm:$0xff]  ;;  %v1227_v5 = vmov 1   ;;  %v1228_v6 = vmov 3   ;;  %v1061_v7 = vld [vmem:[#allocation2 + $0x28] sm:$0xff]  ;;  %v1060_v8 = vld [vmem:[#allocation2 + $0x20] sm:$0xff]  ;;  %s1229_s30 = smov [#allocation7]  }
   0xe   :  { %64 = vperm.xlu0 %1129, %v61_v2   ;;  %77 = vperm.xlu1 %1131, %v61_v2   ;;  %v1059_v9 = vld [vmem:[#allocation2 + $0x18] sm:$0xff]  ;;  %v1058_v10 = vld [vmem:[#allocation2 + $0x10] sm:$0xff]  ;;  %v1057_v11 = vld [vmem:[#allocation2 + $0x8] sm:$0xff]  ;;  %s781_s8 = sshll.u32 %s1229_s30, 4  ;;  %s783_s11 = sshll.u32 %s1319_s7, 4  ;;  %s782_s8 = int_to_ptr.vmem [resolvable:$true] %s781_s8  ;;  %s784_s11 = int_to_ptr.hbm [resolvable:$true] %s783_s11 }
   0xf   :  { %181 = vmatpush.bf16.msra.mxu0 %v1063_v3  ;;  %v1056_v12 = vld [vmem:[#allocation2] sm:$0xff]  ;;  %v1071_v13 = vld [vmem:[#allocation5 + $0x38] sm:$0xff]  ;;  %v1070_v14 = vld [vmem:[#allocation5 + $0x30] sm:$0xff] }
  0x10   :  { %247 = vmatpush.bf16.msra.mxu1 %v1071_v13  ;;  %v1069_v15 = vld [vmem:[#allocation5 + $0x28] sm:$0xff]  ;;  %v1068_v18 = vld [vmem:[#allocation5 + $0x20] sm:$0xff]  ;;  %v1067_v22 = vld [vmem:[#allocation5 + $0x18] sm:$0xff] }
  0x11   :  { %v59_v19 = vld [vmem:[%s1313_s1] sm:$0xf]  ;;  %v1066_v29 = vld [vmem:[#allocation5 + $0x10] sm:$0xff]  ;;  %v1065_v39 = vld [vmem:[#allocation5 + $0x8] sm:$0xff] }
  0x12   :  { %v67_v20 = vperm.slane %v59_v19, 0  ;;  %v73_v21 = vperm.slane %v59_v19, 1  ;;  %v80_v23 = vperm.slane %v59_v19, 2  ;;  %v87_v24 = vperm.slane %v59_v19, 3  ;;  %v1134_v34 = vld [vmem:[%s1314_s2] ss:$0 sm:$0xff] }
  0x13   :  { %182 = vmatpush.bf16.msra.mxu0 %v1062_v4  ;;  %v1064_v40 = vld [vmem:[#allocation5] sm:$0xff]  ;;  %v1079_v41 = vld [vmem:[#allocation2 + $0x78] sm:$0xff]  ;;  %v1078_v42 = vld [vmem:[#allocation2 + $0x70] sm:$0xff] }
  0x14   :  { %248 = vmatpush.bf16.msra.mxu1 %v1070_v14  ;;  %352 = vmatpush.bf16.msra.mxu2 %v1079_v41  ;;  %v1077_v43 = vld [vmem:[#allocation2 + $0x68] sm:$0xff]  ;;  %v1076_v44 = vld [vmem:[#allocation2 + $0x60] sm:$0xff]  ;;  %v1075_v45 = vld [vmem:[#allocation2 + $0x58] sm:$0xff] }
  0x15   :  { %v1074_v46 = vld [vmem:[#allocation2 + $0x50] sm:$0xff]  ;;  %v1135_v47 = vld [vmem:[%s1316_s4] ss:$0 sm:$0xff]  ;;  %v1073_v53 = vld [vmem:[#allocation2 + $0x48] sm:$0xff] }
  0x16   :  { %1130 = vset.pattern.permute.xlu0 %v1227_v5  ;;  %1132 = vset.pattern.permute.xlu1 %v1228_v6  ;;  %v1072_v54 = vld [vmem:[#allocation2 + $0x40] sm:$0xff]  ;;  %v1087_v55 = vld [vmem:[#allocation5 + $0x78] sm:$0xff]  ;;  %v1086_v56 = vld [vmem:[#allocation5 + $0x70] sm:$0xff] }
  0x17   :  { %70 = vperm.xlu0 %1130, %v61_v2   ;;  %84 = vperm.xlu1 %1132, %v61_v2   ;;  %v1085_v57 = vld [vmem:[#allocation5 + $0x68] sm:$0xff]  ;;  %v1084_v58 = vld [vmem:[#allocation5 + $0x60] sm:$0xff]  ;;  %v1083_v59 = vld [vmem:[#allocation5 + $0x58] sm:$0xff] }
  0x18   :  { %183 = vmatpush.bf16.msra.mxu0 %v1061_v7  ;;  %249 = vmatpush.bf16.msra.mxu1 %v1069_v15  ;;  %v1082_v60 = vld [vmem:[#allocation5 + $0x50] sm:$0xff]  ;;  %v1136_v61 = vld [vmem:[%s1318_s6] ss:$0 sm:$0xff]  ;;  %v1081_v4 = vld [vmem:[#allocation5 + $0x48] sm:$0xff] }
  0x19   :  { %353 = vmatpush.bf16.msra.mxu2 %v1078_v42  ;;  %418 = vmatpush.bf16.msra.mxu3 %v1087_v55  ;;  %v1080_v5 = vld [vmem:[#allocation5 + $0x40] sm:$0xff]  ;;  %v1094_v7 = vld [vmem:[#allocation2 + $0xb0] sm:$0xff] }
  0x1a   :  { %v1088_v19 = vld [vmem:[#allocation2 + $0x80] sm:$0xff] }
  0x1b   :  { %v1139_v41 = vld [vmem:[%s1316_s4 + $0x2] ss:$0 sm:$0xff] }
  0x1c   :  { %184 = vmatpush.bf16.msra.mxu0 %v1060_v8  ;;  %250 = vmatpush.bf16.msra.mxu1 %v1068_v18  ;;  %v1093_v8 = vld [vmem:[#allocation2 + $0xa8] sm:$0xff]  ;;  %v1140_v55 = vld [vmem:[%s1318_s6 + $0x2] ss:$0 sm:$0xff] }
  0x1d   :  { %354 = vmatpush.bf16.msra.mxu2 %v1077_v43  ;;  %419 = vmatpush.bf16.msra.mxu3 %v1086_v56  ;;  %v1089_v18 = vld [vmem:[#allocation2 + $0x88] sm:$0xff] }
  0x1f   :  { %1133 = vset.pattern.permute.xlu0 %v1228_v6  ;;  %v1095_v6 = vld [vmem:[#allocation2 + $0xb8] sm:$0xff] }
  0x20   :  { %185 = vmatpush.bf16.msra.mxu0 %v1059_v9  ;;  %251 = vmatpush.bf16.msra.mxu1 %v1067_v22  ;;  %v1092_v9 = vld [vmem:[#allocation2 + $0xa0] sm:$0xff]  ;;  %v1101_v22 = vld [vmem:[#allocation5 + $0xa8] sm:$0xff] }
  0x21   :  { %355 = vmatpush.bf16.msra.mxu2 %v1076_v44  ;;  %420 = vmatpush.bf16.msra.mxu3 %v1085_v57 }
  0x24   :  { %186 = vmatpush.bf16.msra.mxu0 %v1058_v10  ;;  %252 = vmatpush.bf16.msra.mxu1 %v1066_v29  ;;  %v1091_v10 = vld [vmem:[#allocation2 + $0x98] sm:$0xff] }
  0x25   :  { %356 = vmatpush.bf16.msra.mxu2 %v1075_v45  ;;  %421 = vmatpush.bf16.msra.mxu3 %v1084_v58 }
  0x28   :  { %187 = vmatpush.bf16.msra.mxu0 %v1057_v11  ;;  %253 = vmatpush.bf16.msra.mxu1 %v1065_v39  ;;  %v1090_v11 = vld [vmem:[#allocation2 + $0x90] sm:$0xff]  ;;  %v1107_v39 = vld [vmem:[#allocation2 + $0xd8] sm:$0xff] }
  0x29   :  { %357 = vmatpush.bf16.msra.mxu2 %v1074_v46  ;;  %422 = vmatpush.bf16.msra.mxu3 %v1083_v59 }
  0x2c   :  { %188 = vmatpush.bf16.msra.mxu0 %v1056_v12  ;;  %254 = vmatpush.bf16.msra.mxu1 %v1064_v40  ;;  %v1137_v12 = vld [vmem:[%s1316_s4 + $0x1] ss:$0 sm:$0xff]  ;;  %v1106_v40 = vld [vmem:[#allocation2 + $0xd0] sm:$0xff] }
  0x2d   :  { %358 = vmatpush.bf16.msra.mxu2 %v1073_v53  ;;  %423 = vmatpush.bf16.msra.mxu3 %v1082_v60  ;;  %v1115_v53 = vld [vmem:[#allocation5 + $0xd8] sm:$0xff] }
  0x30   :  { %523 = vmatpush.bf16.msrb.mxu0 %v1095_v6  ;;  %v1142_v6 = vld [vmem:[%s1318_s6 + $0x3] ss:$0 sm:$0xff] }
  0x31   :  { %359 = vmatpush.bf16.msra.mxu2 %v1072_v54  ;;  %424 = vmatpush.bf16.msra.mxu3 %v1081_v4  ;;  %v1114_v54 = vld [vmem:[#allocation5 + $0xd0] sm:$0xff] }
  0x34   :  { %524 = vmatpush.bf16.msrb.mxu0 %v1094_v7 }
  0x35   :  { %425 = vmatpush.bf16.msra.mxu3 %v1080_v5 }
  0x38   :  { %525 = vmatpush.bf16.msrb.mxu0 %v1093_v8 }
  0x3c   :  { %526 = vmatpush.bf16.msrb.mxu0 %v1092_v9 }
  0x40   :  { %527 = vmatpush.bf16.msrb.mxu0 %v1091_v10 }
  0x44   :  { %528 = vmatpush.bf16.msrb.mxu0 %v1090_v11 }
  0x48   :  { %529 = vmatpush.bf16.msrb.mxu0 %v1089_v18 }
  0x4c   :  { %530 = vmatpush.bf16.msrb.mxu0 %v1088_v19 }
  0x80   :  { %v65_v16 = vpop.permute.xlu0 %64  ;;  %v78_v17 = vpop.permute.xlu1 %77 }
  0x81   :  { %v68_v27 = vmul.f32 %v67_v20, %v65_v16  ;;  %v81_v30 = vmul.f32 %v80_v23, %v78_v17  ;;  %v1103_v20 = vld [vmem:[#allocation5 + $0xb8] sm:$0xff]  ;;  %v1100_v23 = vld [vmem:[#allocation5 + $0xa0] sm:$0xff] }
  0x82   :  { %589 = vmatpush.bf16.msrb.mxu1 %v1103_v20 }
  0x89   :  { %v71_v25 = vpop.permute.xlu0 %70  ;;  %v85_v26 = vpop.permute.xlu1 %84 }
  0x8a   :  { %v74_v28 = vmul.f32 %v73_v21, %v71_v25  ;;  %v88_v32 = vmul.f32 %v87_v24, %v85_v26  ;;  %v1102_v21 = vld [vmem:[#allocation5 + $0xb0] sm:$0xff]  ;;  %v1099_v24 = vld [vmem:[#allocation5 + $0x98] sm:$0xff]  ;;  %v1138_v26 = vld [vmem:[%s1318_s6 + $0x1] ss:$0 sm:$0xff] }
  0x8b   :  { %590 = vmatpush.bf16.msrb.mxu1 %v1102_v21  ;;  %v1098_v25 = vld [vmem:[#allocation5 + $0x90] sm:$0xff] }
  0x8c   :  { %v75_v31 = vadd.f32 %v74_v28, %v68_v27 }
  0x8e   :  { %v82_v33 = vadd.f32 %v81_v30, %v75_v31 }
  0x8f   :  { %591 = vmatpush.bf16.msrb.mxu1 %v1101_v22 }
  0x90   :  { %v89_v35 = vadd.f32 %v88_v32, %v82_v33  ;;  %v1097_v33 = vld [vmem:[#allocation5 + $0x88] sm:$0xff] }
  0x92   :  { %v93_v36 = vadd.f32 %v1134_v34, %v89_v35  ;;  %v1096_v34 = vld [vmem:[#allocation5 + $0x80] sm:$0xff]  ;;  %v1111_v35 = vld [vmem:[#allocation2 + $0xf8] sm:$0xff] }
  0x93   :  { %592 = vmatpush.bf16.msrb.mxu1 %v1100_v23  ;;  %694 = vmatpush.bf16.msrb.mxu2 %v1111_v35 }
  0x94   :  { %v94_v37 = vmax.f32 %v93_v36, 0.0  ;;  %v1110_v36 = vld [vmem:[#allocation2 + $0xf0] sm:$0xff] }
  0x96   :  { %v129_v38 = vpack.c.bf16 %v94_v37, %v94_v37 }
  0x97   :  { %593 = vmatpush.bf16.msrb.mxu1 %v1099_v24  ;;  %695 = vmatpush.bf16.msrb.mxu2 %v1110_v36 }
  0x98   :  { %189 = vmatmul.bf16.vlgmr.msra.gmra.mxu0 %v129_v38  ;;  %v1108_v38 = vld [vmem:[#allocation2 + $0xe0] sm:$0xff] }
  0x9b   :  { %594 = vmatpush.bf16.msrb.mxu1 %v1098_v25 }
  0x9f   :  { %595 = vmatpush.bf16.msrb.mxu1 %v1097_v33 }
  0xa3   :  { %596 = vmatpush.bf16.msrb.mxu1 %v1096_v34 }
 0x115   :  { %v190_v48 = vpop.f32.mrf.mxu0 }
 0x116   :  { %v191_v49 = vadd.f32 %v1135_v47, %v190_v48  ;;  %v1105_v47 = vld [vmem:[#allocation2 + $0xc8] sm:$0xff]  ;;  %v1104_v48 = vld [vmem:[#allocation2 + $0xc0] sm:$0xff] }
 0x118   :  { %v194_v50 = vmax.f32 %v191_v49, 0.0  ;;  %v1119_v49 = vld [vmem:[#allocation5 + $0xf8] sm:$0xff] }
 0x119   :  { %760 = vmatpush.bf16.msrb.mxu3 %v1119_v49 }
 0x11a   :  { %v195_v51 = vpack.c.bf16 %v194_v50, %v194_v50  ;;  %v1118_v50 = vld [vmem:[#allocation5 + $0xf0] sm:$0xff] }
 0x11c   :  { %255 = vmatmul.bf16.vlgmr.msra.gmra.mxu1 %v195_v51  ;;  %v1117_v51 = vld [vmem:[#allocation5 + $0xe8] sm:$0xff] }
 0x11d   :  { %v192_v52 = vpop.f32.mrf.mxu0  ;;  %761 = vmatpush.bf16.msrb.mxu3 %v1118_v50 }
 0x11e   :  { %v1116_v52 = vld [vmem:[#allocation5 + $0xe0] sm:$0xff] }
 0x121   :  { %762 = vmatpush.bf16.msrb.mxu3 %v1117_v51 }
 0x125   :  { %763 = vmatpush.bf16.msrb.mxu3 %v1116_v52 }
 0x129   :  { %764 = vmatpush.bf16.msrb.mxu3 %v1115_v53 }
 0x12d   :  { %765 = vmatpush.bf16.msrb.mxu3 %v1114_v54 }
 0x199   :  { %v256_v62 = vpop.f32.mrf.mxu1 }
 0x19a   :  { %v257_v63 = vadd.f32 %v1136_v61, %v256_v62  ;;  %v1113_v62 = vld [vmem:[#allocation5 + $0xc8] sm:$0xff] }
 0x19b   :  { %766 = vmatpush.bf16.msrb.mxu3 %v1113_v62 }
 0x19c   :  { %v260_v0 = vmax.f32 %v257_v63, 0.0  ;;  %v1112_v63 = vld [vmem:[#allocation5 + $0xc0] sm:$0xff] }
 0x19e   :  { %v261_v1 = vadd.f32 %v260_v0, %v94_v37  ;;  %v1109_v37 = vld [vmem:[#allocation2 + $0xe8] sm:$0xff]  ;;  %v1141_v0 = vld [vmem:[%s1316_s4 + $0x3] ss:$0 sm:$0xff] }
 0x19f   :  { %696 = vmatpush.bf16.msrb.mxu2 %v1109_v37  ;;  %767 = vmatpush.bf16.msrb.mxu3 %v1112_v63 }
 0x1a0   :  { %v300_v2 = vpack.c.bf16 %v261_v1, %v261_v1 }
 0x1a1   :  { %v258_v3 = vpop.f32.mrf.mxu1 }
 0x1a2   :  { %360 = vmatmul.bf16.vlgmr.msra.gmra.mxu2 %v300_v2 }
 0x1a3   :  { %697 = vmatpush.bf16.msrb.mxu2 %v1108_v38 }
 0x1a7   :  { %698 = vmatpush.bf16.msrb.mxu2 %v1107_v39 }
 0x1ab   :  { %699 = vmatpush.bf16.msrb.mxu2 %v1106_v40 }
 0x1af   :  { %700 = vmatpush.bf16.msrb.mxu2 %v1105_v47 }
 0x1b3   :  { %701 = vmatpush.bf16.msrb.mxu2 %v1104_v48 }
 0x225   :  { %v361_v13 = vpop.f32.mrf.mxu2 }
 0x226   :  { %v362_v14 = vadd.f32 %v1137_v12, %v361_v13 }
 0x228   :  { %v365_v15 = vmax.f32 %v362_v14, 0.0 }
 0x22a   :  { %v366_v16 = vpack.c.bf16 %v365_v15, %v365_v15 }
 0x22c   :  { %426 = vmatmul.bf16.vlgmr.msra.gmra.mxu3 %v366_v16 }
 0x22d   :  { %v363_v17 = vpop.f32.mrf.mxu2 }
 0x2af   :  { %v427_v27 = vpop.f32.mrf.mxu3 }
 0x2b0   :  { %v428_v28 = vadd.f32 %v1138_v26, %v427_v27 }
 0x2b2   :  { %v431_v29 = vmax.f32 %v428_v28, 0.0 }
 0x2b4   :  { %v432_v30 = vadd.f32 %v431_v29, %v261_v1 }
 0x2b6   :  { %v471_v31 = vpack.c.bf16 %v432_v30, %v432_v30 }
 0x2b7   :  { %v429_v32 = vpop.f32.mrf.mxu3 }
 0x2b8   :  { %531 = vmatmul.bf16.vlgmr.msrb.gmra.mxu0 %v471_v31 }
 0x335   :  { %v532_v42 = vpop.f32.mrf.mxu0 }
 0x336   :  { %v533_v43 = vadd.f32 %v1139_v41, %v532_v42 }
 0x338   :  { %v536_v44 = vmax.f32 %v533_v43, 0.0 }
 0x33a   :  { %v537_v45 = vpack.c.bf16 %v536_v44, %v536_v44 }
 0x33c   :  { %597 = vmatmul.bf16.vlgmr.msrb.gmra.mxu1 %v537_v45 }
 0x33d   :  { %v534_v46 = vpop.f32.mrf.mxu0 }
 0x3b9   :  { %v598_v56 = vpop.f32.mrf.mxu1 }
 0x3ba   :  { %v599_v57 = vadd.f32 %v1140_v55, %v598_v56 }
 0x3bc   :  { %v602_v58 = vmax.f32 %v599_v57, 0.0 }
 0x3be   :  { %v603_v59 = vadd.f32 %v602_v58, %v432_v30 }
 0x3c0   :  { %v642_v60 = vpack.c.bf16 %v603_v59, %v603_v59 }
 0x3c1   :  { %v600_v61 = vpop.f32.mrf.mxu1 }
 0x3c2   :  { %702 = vmatmul.bf16.vlgmr.msrb.gmra.mxu2 %v642_v60 }
 0x445   :  { %v703_v1 = vpop.f32.mrf.mxu2 }
 0x446   :  { %v704_v2 = vadd.f32 %v1141_v0, %v703_v1 }
 0x448   :  { %v707_v3 = vmax.f32 %v704_v2, 0.0 }
 0x44a   :  { %v708_v4 = vpack.c.bf16 %v707_v3, %v707_v3 }
 0x44c   :  { %768 = vmatmul.bf16.vlgmr.msrb.gmra.mxu3 %v708_v4 }
 0x44d   :  { %v705_v5 = vpop.f32.mrf.mxu2 }
 0x4cf   :  { %v769_v7 = vpop.f32.mrf.mxu3 }
 0x4d0   :  { %v770_v8 = vadd.f32 %v1142_v6, %v769_v7 }
 0x4d2   :  { %v773_v9 = vmax.f32 %v770_v8, 0.0 }
 0x4d4   :  { %v774_v10 = vadd.f32 %v773_v9, %v603_v59 }
 0x4d6   :  { %775 = vst [vmem:[#allocation7] sm:$0xff] %v774_v10 }
 0x4d7   :  { %v771_v11 = vpop.f32.mrf.mxu3  ;;  %786 = dma.vmem_to_hbm [thread:$0]  %s782_s8, 128, %s784_s11, [#allocation4]  }
 0x4d8   :  { %1219 = dma.done.wait [#allocation4], 128  }
 0x4d9   :  { %1220 = vsyncadd [#allocation4], 4294967168 }
 0x4da   :  { %791 = vsyncpa [#allocation3], 1 }
 0x4db   :  { %792 = vsyncpa [#allocation6], 1 }
 0x4dc   :  { %793 = vsyncpa [#allocation4], 1 }

</bundles_post_ra>
